<compile_context>
chip_gen: v6e
topology: v6e:2x2x1
jax: 0.10.0
libtpu: 0.0.40
codegen_flags: <defaults>
</compile_context>

<pallas_src>
import functools
import math

import jax
import jax.numpy as jnp
from jax.experimental import pallas as pl
from jax.experimental.pallas import tpu as pltpu


def _round_up(x, m):
    return ((x + m - 1) // m) * m


def _vmem_budget_bytes():
    """Scoped-VMEM budget: physical capacity minus headroom, clamped.

    Fallback (48 MiB) is safe on every generation (v7x has only 64 MiB/TC);
    on v5e/v6e (128 MiB physical) this resolves to ~112 MiB so tiles can grow.
    """
    try:
        cap = int(pltpu.get_tpu_info().vmem_capacity_bytes)
    except Exception:
        cap = 64 * 1024 * 1024
    return max(32 * 1024 * 1024, min(cap - 16 * 1024 * 1024, 112 * 1024 * 1024))


def channel_attn_kernel(mask_ref, fm_ref, w_ref, out_ref, x_acc, *, n_tasks, c_out_pad):
    # mask_ref: (n_tasks, TB, 1)        f32 one-hot task mask
    # fm_ref  : (TB, C, HW_TILE)        feature-map slab (input dtype)
    # w_ref   : (n_tasks, C, 3*c_out_pad) bf16 stacked [W1|W2|Wres]^T, pre-scaled by 1/(H*W)
    # out_ref : (TB, c_out_pad)         f32
    # x_acc   : (TB, C)                 f32 scratch - pooled-sum accumulator over HW tiles
    s = pl.program_id(1)

    @pl.when(s == 0)
    def _init():
        x_acc[...] = jnp.zeros_like(x_acc)

    # Partial spatial sum; the (bf16->)f32 cast is fused into the reduction so no
    # full-tile f32 temp is materialized.
    x_acc[...] += jnp.sum(fm_ref[...], axis=-1, dtype=jnp.float32)

    @pl.when(s == pl.num_programs(1) - 1)
    def _finalize():
        x = x_acc[...].astype(w_ref.dtype)  # small bf16 feed for the MXU
        acc = jnp.zeros((x.shape[0], 3 * c_out_pad), jnp.float32)
        # n_tasks is small & static: one masked MXU dot per task against the
        # VMEM-resident stacked weights.
        # TODO(synk): for large n_tasks switch to task-grouped tiles (sort batch
        # by task id + PrefetchScalarGridSpec group offsets) to drop this loop.
        for t in range(n_tasks):
            y = jnp.dot(x, w_ref[t], preferred_element_type=jnp.float32)
            acc = acc + mask_ref[t] * y
        y1 = acc[:, :c_out_pad]
        y2 = acc[:, c_out_pad:2 * c_out_pad]
        yres = acc[:, 2 * c_out_pad:]
        rho = jnp.tanh(y1) * jax.nn.sigmoid(y2) + yres
        out_ref[...] = rho.astype(out_ref.dtype)


def channel_attn(fm_t, tasks_id, w1_t, w2_t, wres_t, *, block_b=128, hw_block=None):
    """ChannelAttn.forward.

    fm_t     : (B, C, H, W) feature map
    tasks_id : (B,) int task id per sample
    w*_t     : (n_tasks, C_in, C_out) per-task weights (PyTorch stores (out, in);
               pre-transposed here).
    hw_block : optional override for the spatial tile (multiple of 128).
    """
    B, C, H, W = fm_t.shape
    n_tasks, c_in, c_out = w1_t.shape
    assert c_in == C
    hw = H * W

    # Pad each stacked output segment to a 128-lane multiple: vreg-aligned
    # y1/y2/yres slices and an unmasked lane-dense output store.
    c_out_pad = _round_up(c_out, 128)

    # Batch tile: multiple of 8 and >=2 batch grid steps so both v7x TensorCores
    # get work (harmless on single-TC v5e/v6e - the grid is just a serial loop).
    tb = min(block_b, max(8, _round_up(-(-B // 2), 8)))
    b_pad = max(_round_up(B, tb), 2 * tb)

    # --- VMEM budget & spatial (HW) tiling ------------------------------------
    vmem_limit = _vmem_budget_bytes()
    itemsize = jnp.dtype(fm_t.dtype).itemsize
    w_bytes = n_tasks * C * 3 * c_out_pad * 2                 # bf16 resident weights
    fixed_bytes = (w_bytes
                   + 2 * tb * c_out_pad * 4                   # double-buffered out tile
                   + tb * C * 4                               # x accumulator scratch
                   + 2 * n_tasks * tb * 128 * 4)              # lane-padded mask blocks
    fm_budget = vmem_limit - fixed_bytes - (8 << 20)          # compiler-scratch headroom
    fm_tile_cap = max(fm_budget // 2, 8 * C * 128 * itemsize)  # fm slab is double-buffered

    if hw_block is not None:
        hw_tile = hw if hw_block >= hw else hw_block
    elif tb * C * hw * itemsize <= fm_tile_cap:
        hw_tile = hw                                          # single spatial slab
    else:
        hw_tile = max(128, ((fm_tile_cap // (tb * C * itemsize)) // 128) * 128)
    assert hw_tile == hw or hw_tile % 128 == 0
    hw_pad = hw if hw_tile == hw else _round_up(hw, hw_tile)

    # --- wrapper-side layout plumbing ------------------------------------------
    # Flatten spatial dims (free reshape for contiguous NCHW). NOTE: padding HW
    # costs one extra HBM copy - provide 128-aligned H*W upstream to avoid it.
    fm_flat = fm_t.reshape(B, C, hw)
    if b_pad != B or hw_pad != hw:
        fm_flat = jnp.pad(fm_flat, ((0, b_pad - B), (0, 0), (0, hw_pad - hw)))

    # One-hot task mask precomputed once; padded batch rows get an all-zero mask
    # (they produce rho == 0 and are sliced away below).
    onehot = jax.nn.one_hot(tasks_id.astype(jnp.int32), n_tasks, dtype=jnp.float32)
    if b_pad != B:
        onehot = jnp.pad(onehot, ((0, b_pad - B), (0, 0)))
    mask = jnp.transpose(onehot)[:, :, None]                  # (n_tasks, b_pad, 1)

    # Stacked, lane-padded, mean-folded, bf16 weights (single resident DMA).
    def _pad_out(w):
        return jnp.pad(w, ((0, 0), (0, 0), (0, c_out_pad - c_out)))

    w_stacked = jnp.concatenate([_pad_out(w1_t), _pad_out(w2_t), _pad_out(wres_t)], axis=-1)
    w_stacked = (w_stacked.astype(jnp.float32) * (1.0 / float(hw))).astype(jnp.bfloat16)

    grid = (b_pad // tb, hw_pad // hw_tile)

    kernel = functools.partial(channel_attn_kernel, n_tasks=n_tasks, c_out_pad=c_out_pad)

    cost = pl.CostEstimate(
        flops=2 * b_pad * C * 3 * c_out_pad * n_tasks + b_pad * C * hw_pad,
        transcendentals=2 * b_pad * c_out_pad,
        bytes_accessed=(b_pad * C * hw_pad * itemsize
                        + int(w_stacked.size) * 2
                        + b_pad * c_out_pad * 4
                        + int(mask.size) * 4),
    )

    out = pl.pallas_call(
        kernel,
        out_shape=jax.ShapeDtypeStruct((b_pad, c_out_pad), jnp.float32),
        grid=grid,
        in_specs=[
            # one-hot task mask per batch tile (constant across HW steps)
            pl.BlockSpec((n_tasks, tb, 1), lambda i, s: (0, i, 0)),
            # feature-map slab: batch tile i, spatial tile s
            # (consider pipeline_mode=pl.Buffered(3) if profiles show exposed DMA)
            pl.BlockSpec((tb, C, hw_tile), lambda i, s: (i, 0, s)),
            # stacked weights: VMEM-resident (constant block index -> one DMA)
            pl.BlockSpec((n_tasks, C, 3 * c_out_pad), lambda i, s: (0, 0, 0)),
        ],
        out_specs=pl.BlockSpec((tb, c_out_pad), lambda i, s: (i, 0)),
        scratch_shapes=[pltpu.VMEM((tb, C), jnp.float32)],
        compiler_params=pltpu.CompilerParams(
            dimension_semantics=("parallel", "arbitrary"),
            vmem_limit_bytes=int(vmem_limit),
        ),
        cost_estimate=cost,
    )(mask, fm_flat, w_stacked)

    return out[:B, :c_out]


def kaiming_fan_out_weights(key, n_tasks, fout, fin, nonlinearity):
    """Mirrors get_rnd_weight: per-task (fout, fin) matrices, kaiming_normal_
    with mode='fan_out' (fan = fout)."""
    gains = {"relu": math.sqrt(2.0), "tanh": 5.0 / 3.0, "sigmoid": 1.0}
    std = gains[nonlinearity] / math.sqrt(fout)
    return jax.random.normal(key, (n_tasks, fout, fin), dtype=jnp.float32) * std


if __name__ == "__main__":
    B, C, H, W = 2, 4, 16, 16
    n_tasks = 3
    reduction_rate = 1
    c_out = C // reduction_rate

    key = jax.random.PRNGKey(0)
    k_fm, k_tid, k1, k2, k3 = jax.random.split(key, 5)

    fm_t = jax.random.normal(k_fm, (B, C, H, W), dtype=jnp.float32)
    tasks_id = jax.random.randint(k_tid, (B,), 0, n_tasks, dtype=jnp.int32)

    # Per-task weights in PyTorch (fout, fin) convention ...
    w1 = kaiming_fan_out_weights(k1, n_tasks, c_out, C, "tanh")      # l1
    w2 = kaiming_fan_out_weights(k2, n_tasks, c_out, C, "sigmoid")   # l2
    wres = kaiming_fan_out_weights(k3, n_tasks, c_out, C, "relu")    # lres

    # ... pre-transposed to (n_tasks, C_in, C_out) for the kernel.
    w1_t = jnp.transpose(w1, (0, 2, 1))
    w2_t = jnp.transpose(w2, (0, 2, 1))
    wres_t = jnp.transpose(wres, (0, 2, 1))

    # hw_block=128 forces two spatial grid steps to exercise the reduction axis.
    rho = jax.block_until_ready(
        channel_attn(fm_t, tasks_id, w1_t, w2_t, wres_t, hw_block=128))
    assert rho.shape == (B, c_out)

    # --- Pure-JAX references ---------------------------------------------------
    # (a) exact module semantics in f32
    x_mean = jnp.mean(fm_t, axis=(2, 3))                              # (B, C)

    def cond_linear(w, x, tid):                                       # w: (n_tasks, fout, fin)
        return jnp.einsum("boi,bi->bo", w[tid], x)

    rho_f32 = (jnp.tanh(cond_linear(w1, x_mean, tasks_id))
               * jax.nn.sigmoid(cond_linear(w2, x_mean, tasks_id))
               + cond_linear(wres, x_mean, tasks_id))

    # (b) reference matching the kernel's bf16 weight / pooled-activation quantization
    x_sum = jnp.sum(fm_t.reshape(B, C, -1), axis=-1)
    xq = x_sum.astype(jnp.bfloat16).astype(jnp.float32)

    def q(wt):                                                        # wt: (n_tasks, fin, fout)
        return (wt.astype(jnp.float32) / float(H * W)).astype(jnp.bfloat16).astype(jnp.float32)

    def cond_linear_t(wt, xv, tid):
        return jnp.einsum("bio,bi->bo", wt[tid], xv)

    rho_q = (jnp.tanh(cond_linear_t(q(w1_t), xq, tasks_id))
             * jax.nn.sigmoid(cond_linear_t(q(w2_t), xq, tasks_id))
             + cond_linear_t(q(wres_t), xq, tasks_id))

    assert jnp.allclose(rho, rho_q, atol=5e-3, rtol=5e-3), (rho, rho_q)
    assert jnp.allclose(rho, rho_f32, atol=3e-2, rtol=3e-2), (rho, rho_f32)
    print("KERNEL_OK")
</pallas_src>

<mosaic_0001>
module attributes {stable_mosaic.version = 11 : i64} {
  func.func @channel_attn_kernel(%arg0: i32, %arg1: i32, %arg2: memref<3x8x1xf32, #tpu.memory_space<vmem>>, %arg3: memref<8x4x128xf32, #tpu.memory_space<vmem>>, %arg4: memref<3x4x384xbf16, #tpu.memory_space<vmem>>, %arg5: memref<8x128xf32, #tpu.memory_space<vmem>>, %arg6: memref<8x4xf32, #tpu.memory_space<vmem>>) attributes {dimension_semantics = [#tpu.dimension_semantics<parallel>, #tpu.dimension_semantics<arbitrary>], iteration_bounds = array<i64: 2, 2>, scalar_prefetch = 0 : i64, scratch_operands = 1 : i64, tpu.core_type = #tpu.core_type<tc>, window_params = [{transform_indices = @transform_0, window_bounds = array<i64: 3, 8, 1>}, {transform_indices = @transform_1, window_bounds = array<i64: 8, 4, 128>}, {pipeline_mode = #tpu.pipeline_mode<synchronous>, transform_indices = @transform_2, window_bounds = array<i64: 3, 4, 384>}, {transform_indices = @transform_3, window_bounds = array<i64: 8, 128>}]} {
    %c0_i32 = arith.constant 0 : i32
    %0 = arith.cmpi eq, %arg1, %c0_i32 : i32
    %1 = arith.extui %0 : i1 to i32
    %c0_i32_0 = arith.constant 0 : i32
    %2 = arith.cmpi ne, %1, %c0_i32_0 : i32
    scf.if %2 {
      %cst_8 = arith.constant 0.000000e+00 : f32
      %11 = vector.broadcast %cst_8 : f32 to vector<8x4xf32>
      %c0_9 = arith.constant 0 : index
      %c0_10 = arith.constant 0 : index
      %12 = vector.load %arg6[%c0_9, %c0_10] : memref<8x4xf32, #tpu.memory_space<vmem>>, vector<8x4xf32>
      tpu.vector_store %arg6[%c0_9, %c0_10], %11 {strides = array<i32>} : memref<8x4xf32, #tpu.memory_space<vmem>>, vector<8x4xf32>,
    } else {
    }
    %c0 = arith.constant 0 : index
    %c0_1 = arith.constant 0 : index
    %3 = vector.load %arg6[%c0, %c0_1] : memref<8x4xf32, #tpu.memory_space<vmem>>, vector<8x4xf32>
    %c0_2 = arith.constant 0 : index
    %c0_3 = arith.constant 0 : index
    %c0_4 = arith.constant 0 : index
    %4 = vector.load %arg3[%c0_2, %c0_3, %c0_4] : memref<8x4x128xf32, #tpu.memory_space<vmem>>, vector<8x4x128xf32>
    %cst = arith.constant dense<0.000000e+00> : vector<8x4xf32>
    %5 = vector.multi_reduction <add>, %4, %cst [2] : vector<8x4x128xf32> to vector<8x4xf32>
    %6 = arith.addf %3, %5 : vector<8x4xf32>
    %c0_5 = arith.constant 0 : index
    %c0_6 = arith.constant 0 : index
    %7 = vector.load %arg6[%c0_5, %c0_6] : memref<8x4xf32, #tpu.memory_space<vmem>>, vector<8x4xf32>
    tpu.vector_store %arg6[%c0_5, %c0_6], %6 {strides = array<i32>} : memref<8x4xf32, #tpu.memory_space<vmem>>, vector<8x4xf32>,
    %c1_i32 = arith.constant 1 : i32
    %8 = arith.cmpi eq, %arg1, %c1_i32 : i32
    %9 = arith.extui %8 : i1 to i32
    %c0_i32_7 = arith.constant 0 : i32
    %10 = arith.cmpi ne, %9, %c0_i32_7 : i32
    scf.if %10 {
      %c0_8 = arith.constant 0 : index
      %c0_9 = arith.constant 0 : index
      %11 = vector.load %arg6[%c0_8, %c0_9] : memref<8x4xf32, #tpu.memory_space<vmem>>, vector<8x4xf32>
      %12 = arith.truncf %11 : vector<8x4xf32> to vector<8x4xbf16>
      %cst_10 = arith.constant 0.000000e+00 : f32
      %13 = vector.broadcast %cst_10 : f32 to vector<8x384xf32>
      %c0_11 = arith.constant 0 : index
      %c0_12 = arith.constant 0 : index
      %c0_13 = arith.constant 0 : index
      %14 = vector.load %arg4[%c0_11, %c0_12, %c0_13] : memref<3x4x384xbf16, #tpu.memory_space<vmem>>, vector<1x4x384xbf16>
      %15 = vector.shape_cast %14 : vector<1x4x384xbf16> to vector<4x384xbf16>
      %cst_14 = arith.constant dense<0.000000e+00> : vector<8x384xf32>
      %16 = tpu.matmul %12, %15, %cst_14 {dimension_numbers = #tpu.dot_dimension_numbers<[1], [0], [0], [1], [0, 0, 1, 1], [], []>} : vector<8x4xbf16>, vector<4x384xbf16>, vector<8x384xf32> -> vector<8x384xf32>
      %c0_15 = arith.constant 0 : index
      %c0_16 = arith.constant 0 : index
      %c0_17 = arith.constant 0 : index
      %17 = vector.load %arg2[%c0_15, %c0_16, %c0_17] : memref<3x8x1xf32, #tpu.memory_space<vmem>>, vector<1x8x1xf32>
      %18 = vector.shape_cast %17 : vector<1x8x1xf32> to vector<8x1xf32>
      %19 = vector.broadcast %18 : vector<8x1xf32> to vector<8x384xf32>
      %20 = arith.mulf %19, %16 : vector<8x384xf32>
      %21 = arith.addf %13, %20 : vector<8x384xf32>
      %c1 = arith.constant 1 : index
      %c0_18 = arith.constant 0 : index
      %c0_19 = arith.constant 0 : index
      %22 = vector.load %arg4[%c1, %c0_18, %c0_19] : memref<3x4x384xbf16, #tpu.memory_space<vmem>>, vector<1x4x384xbf16>
      %23 = vector.shape_cast %22 : vector<1x4x384xbf16> to vector<4x384xbf16>
      %cst_20 = arith.constant dense<0.000000e+00> : vector<8x384xf32>
      %24 = tpu.matmul %12, %23, %cst_20 {dimension_numbers = #tpu.dot_dimension_numbers<[1], [0], [0], [1], [0, 0, 1, 1], [], []>} : vector<8x4xbf16>, vector<4x384xbf16>, vector<8x384xf32> -> vector<8x384xf32>
      %c1_21 = arith.constant 1 : index
      %c0_22 = arith.constant 0 : index
      %c0_23 = arith.constant 0 : index
      %25 = vector.load %arg2[%c1_21, %c0_22, %c0_23] : memref<3x8x1xf32, #tpu.memory_space<vmem>>, vector<1x8x1xf32>
      %26 = vector.shape_cast %25 : vector<1x8x1xf32> to vector<8x1xf32>
      %27 = vector.broadcast %26 : vector<8x1xf32> to vector<8x384xf32>
      %28 = arith.mulf %27, %24 : vector<8x384xf32>
      %29 = arith.addf %21, %28 : vector<8x384xf32>
      %c2 = arith.constant 2 : index
      %c0_24 = arith.constant 0 : index
      %c0_25 = arith.constant 0 : index
      %30 = vector.load %arg4[%c2, %c0_24, %c0_25] : memref<3x4x384xbf16, #tpu.memory_space<vmem>>, vector<1x4x384xbf16>
      %31 = vector.shape_cast %30 : vector<1x4x384xbf16> to vector<4x384xbf16>
      %cst_26 = arith.constant dense<0.000000e+00> : vector<8x384xf32>
      %32 = tpu.matmul %12, %31, %cst_26 {dimension_numbers = #tpu.dot_dimension_numbers<[1], [0], [0], [1], [0, 0, 1, 1], [], []>} : vector<8x4xbf16>, vector<4x384xbf16>, vector<8x384xf32> -> vector<8x384xf32>
      %c2_27 = arith.constant 2 : index
      %c0_28 = arith.constant 0 : index
      %c0_29 = arith.constant 0 : index
      %33 = vector.load %arg2[%c2_27, %c0_28, %c0_29] : memref<3x8x1xf32, #tpu.memory_space<vmem>>, vector<1x8x1xf32>
      %34 = vector.shape_cast %33 : vector<1x8x1xf32> to vector<8x1xf32>
      %35 = vector.broadcast %34 : vector<8x1xf32> to vector<8x384xf32>
      %36 = arith.mulf %35, %32 : vector<8x384xf32>
      %37 = arith.addf %29, %36 : vector<8x384xf32>
      %38 = vector.extract_strided_slice %37 {offsets = [0, 0], sizes = [8, 128], strides = [1, 1]} : vector<8x384xf32> to vector<8x128xf32>
      %39 = vector.extract_strided_slice %37 {offsets = [0, 128], sizes = [8, 128], strides = [1, 1]} : vector<8x384xf32> to vector<8x128xf32>
      %40 = vector.extract_strided_slice %37 {offsets = [0, 256], sizes = [8, 128], strides = [1, 1]} : vector<8x384xf32> to vector<8x128xf32>
      %41 = math.tanh %38 : vector<8x128xf32>
      %42 = arith.negf %39 : vector<8x128xf32>
      %43 = math.exp %42 : vector<8x128xf32>
      %cst_30 = arith.constant 1.000000e+00 : f32
      %44 = vector.broadcast %cst_30 : f32 to vector<8x128xf32>
      %45 = arith.addf %44, %43 : vector<8x128xf32>
      %46 = arith.divf %44, %45 : vector<8x128xf32>
      %47 = arith.mulf %41, %46 : vector<8x128xf32>
      %48 = arith.addf %47, %40 : vector<8x128xf32>
      %c0_31 = arith.constant 0 : index
      %c0_32 = arith.constant 0 : index
      %49 = vector.load %arg5[%c0_31, %c0_32] : memref<8x128xf32, #tpu.memory_space<vmem>>, vector<8x128xf32>
      tpu.vector_store %arg5[%c0_31, %c0_32], %48 {strides = array<i32>} : memref<8x128xf32, #tpu.memory_space<vmem>>, vector<8x128xf32>,
    } else {
    }
    return
  }
  func.func @transform_0(%arg0: i32, %arg1: i32) -> (i32, i32, i32) {
    %c0_i32 = arith.constant 0 : i32
    %c0_i32_0 = arith.constant 0 : i32
    %c0_i32_1 = arith.constant 0 : i32
    return %c0_i32, %arg0, %c0_i32_0 : i32, i32, i32
  }
  func.func @transform_1(%arg0: i32, %arg1: i32) -> (i32, i32, i32) {
    %c0_i32 = arith.constant 0 : i32
    %c0_i32_0 = arith.constant 0 : i32
    return %arg0, %c0_i32, %arg1 : i32, i32, i32
  }
  func.func @transform_2(%arg0: i32, %arg1: i32) -> (i32, i32, i32) {
    %c0_i32 = arith.constant 0 : i32
    %c0_i32_0 = arith.constant 0 : i32
    %c0_i32_1 = arith.constant 0 : i32
    %c0_i32_2 = arith.constant 0 : i32
    return %c0_i32, %c0_i32_0, %c0_i32_1 : i32, i32, i32
  }
  func.func @transform_3(%arg0: i32, %arg1: i32) -> (i32, i32) {
    %c0_i32 = arith.constant 0 : i32
    %c0_i32_0 = arith.constant 0 : i32
    return %arg0, %c0_i32 : i32, i32
  }
}

</mosaic_0001>

<bundles_post_ra>
// kernel: tpu_custom_call.1
= control target key start
LH: loop header
LB: loop body
LE: loop exit
PB: predicated region body
PF: predicated region fallthrough
CT: control target
= control target key end

     0   :  { %s1464_s0 = inlined_call_operand.vmem [shape: f32[3,16,1], index: 0, kind: input, shape index: {}]   ;;  %s1465_s1 = inlined_call_operand.hbm [shape: f32[16,4,256], index: 1, kind: input, shape index: {}]   ;;  %s1466_s2 = inlined_call_operand.vmem [shape: bf16[3,4,384], index: 2, kind: input, shape index: {}]   ;;  %s1467_s3 = inlined_call_operand.hbm [shape: f32[16,128], index: 3, kind: output, shape index: {}]  }
   0x1   :  { %1472 = sst [smem:[#allocation15_spill]] %s1464_s0 }
   0x2   :  { %8 = vsyncpa [#allocation5], 0 }
   0x3   :  { %10 = vsyncpa [#allocation5 + $0x1], 0 }
   0x4   :  { %11 = vsyncpa [#allocation6], 0 }
   0x5   :  { %13 = vsyncpa [#allocation6 + $0x1], 0  ;;  %s1222_s12 = smov 0   ;;  %s1224_s13 = smov 0  }
   0x6   :  { %s1226_s14 = smov 0   ;;  %s1228_s15 = smov 0  }
   0x7   :  { %s1230_s16 = smov 0   ;;  %s1232_s17 = smov 0  }
   0x8   :  { %s1234_s18 = smov 0   ;;  %s1236_s19 = smov 0  }
   0x9   :  { %s1238_s20 = smov 0   ;;  %s1240_s21 = smov 0  }
   0xa   :  { %s1242_s22 = smov 0  }
   0xb LB: > { %1473 = sst [smem:[#allocation10_spill]] %s1170_s17  ;;  %s869_s23 = sadd.s32 4294967295, %s1190_s22   ;;  %s1190_s22 = sphi %s1242_s22, %s19_s22   ;;  %s1186_s21 = sphi %s1240_s21, %s1488_s21   ;;  %s1182_s20 = sphi %s1238_s20, %s1495_s20   ;;  %s1178_s19 = sphi %s1236_s19, %s1486_s19   ;;  %s1174_s18 = sphi %s1234_s18, %s1494_s18   ;;  %s1170_s17 = sphi %s1232_s17, %s1485_s17   ;;  %s1166_s16 = sphi %s1230_s16, %s1493_s16   ;;  %s1162_s15 = sphi %s1228_s15, %s1492_s15   ;;  %s1158_s14 = sphi %s1226_s14, %s1491_s14   ;;  %s1154_s13 = sphi %s1224_s13, %s1490_s13   ;;  %s1150_s12 = sphi %s1222_s12, %s1489_s12  }
   0xc   : > { %1474 = sst [smem:[#allocation11_spill]] %s1186_s21  ;;  %s870_s24 = sadd.s32 4294967294, %s1190_s22  }
   0xd   : > { %s28_s25 = sadd.s32 1, %s1182_s20  ;;  %s31_s26 = sadd.s32 1, %s1186_s21 }
   0xe   : > { %p29_p0 = scmp.ge.s32.totalorder %s28_s25, 2  ;;  %s38_s27 = sadd.s32 1, %s1170_s17 }
   0xf   : > { %p45_p1 = scmp.ne.s32.totalorder %s1170_s17, %s1166_s16  ;;  %p46_p2 = scmp.eq.s32.totalorder %s1190_s22, 0 }
  0x10   : > { %s1497_s25 = smov (%p29_p0, %s28_s25), 0  ;;  %s1499_s26 = smov (!%p29_p0, %s31_s26), %s1186_s21 }
  0x11   : > { %1475 = sst [smem:[#allocation12_spill]] %s1497_s25  ;;  %p1291_p3 = por %p46_p2, %p45_p1 }
  0x12   : > { %s62_s29 = ssub.s32 %s1182_s20, %s1497_s25  ;;  %p33_p4 = scmp.ge.s32.totalorder %s1499_s26, 2 }
  0x13   : > { %s66_s30 = sadd.s32 1, %s1162_s15  ;;  %p73_p5 = scmp.ne.s32.totalorder %s1162_s15, %s1158_s14 }
  0x14   : > { %p79_p6 = scmp.ne.s32.totalorder %s1158_s14, %s1154_s13  ;;  %s1501_s26 = smov (%p33_p4, %s1499_s26), 0 }
  0x15   : > { %1477 = sst [smem:[#allocation13_spill]] %s1501_s26  ;;  %p1304_p7 = por %p73_p5, %p46_p2 }
  0x16   : > { %p80_p8 = scmp.eq.s32.totalorder %s869_s23, 0  ;;  %s35_s5 = ssub.s32 %s1186_s21, %s1501_s26 }
  0x17   : > { %p124_p9 = scmp.eq.s32.totalorder %s869_s23, 3  ;;  %p36_p10 = scmp.eq.s32.totalorder %s35_s5, 0 }
  0x18   : > { %s63_s6 = sor.u32 %s62_s29, %s35_s5  ;;  %p1310_p12 = por %p80_p8, %p79_p6 }
  0x19   : > { %p64_p11 = scmp.eq.s32.totalorder %s63_s6, 0  ;;  %p1323_p13 = por %p124_p9, %p45_p1 }
  0x1a   : > { %s1315_s8 = scalar_select %p36_p10, %s1170_s17, %s38_s27  }
  0x1b   : > { %s1318_s9 = scalar_select %p64_p11, %s1162_s15, %s66_s30  }
  0x1c   : > { %1480 = sst [smem:[#allocation14_spill]] %s1315_s8  ;;  %p129_p0 = scmp.ne.s32.totalorder %s1166_s16, %s1150_s12 }
  0x1d   : > { %p130_p2 = scmp.eq.s32.totalorder %s870_s24, 3  ;;  %p872_p5 = scmp.ge.s32.totalorder %s1190_s22, 4 }
  0x1f   : > { %p1329_p4 = por %p130_p2, %p129_p0  ;;  %149 = sbr.rel (%p872_p5) target bundleno = 66 (0x42), region = 20 }
  0x24   : > { %152 = sbr.rel (!%p1291_p3) target bundleno = 48 (0x30), region = 24  ;;  %s154_s13 = sand.u32 (%p1291_p3), 1, %s1170_s17  }
  0x25   : > { %s873_s23 = sshll.u32 (%p1291_p3), %s1186_s21, 3  ;;  %s926_s27 = smul.u32 (%p1291_p3), 24, %s154_s13 }
  0x26   : > { %s1483_s0 = sld [smem:[#allocation15_spill]] (%p1291_p3) }
  0x27   : > { %s156_s24 = scalar_lea.vmem (%p1291_p3), [#allocation3], %s926_s27 }
  0x2c   : > { %s158_s5 = scalar_lea.vmem %s1483_s0, %s873_s23 }
  0x2d   : > { %v191_v0 = vld [vmem:[%s158_s5] sm:$0xff]  ;;  %v193_v1 = vld [vmem:[%s158_s5 + $0x10] sm:$0xff] }
  0x2e   : > { %v195_v2 = vld [vmem:[%s158_s5 + $0x20] sm:$0xff]  ;;  %192 = vst [vmem:[%s156_s24] sm:$0xff] %v191_v0  ;;  %194 = vst [vmem:[%s156_s24 + $0x8] sm:$0xff] %v193_v1 }
  0x2f   : > { %196 = vst [vmem:[%s156_s24 + $0x10] sm:$0xff] %v195_v2 }
  0x30 PF: > { %s203_s28 = sand.u32 1, %s1162_s15   ;;  %s901_s6 = sshll.u32 %s1186_s21, 4 }
  0x31   : > { %s874_s26 = sshll.u32 %s203_s28, 5  ;;  %s213_s13 = sadd.s32 %s1182_s20, %s901_s6 }
  0x32   : > { %s877_s25 = sshll.u32 %s213_s13, 6  ;;  %s207_s8 = scalar_lea.vmem [#allocation4], %s874_s26 }
  0x33   : > { %s216_s29 = sshll.u32 %s207_s8, 4  ;;  %s215_s5 = scalar_lea.hbm %s1465_s1, %s877_s25  ;;  %s217_s29 = int_to_ptr.vmem [resolvable:$true] %s216_s29 }
  0x34   : > { %s204_s27 = scalar_lea.sflag [#allocation5], %s203_s28  ;;  %s1056_s0 = scalar_lea.vmem %s217_s29, 512 }
  0x35   : > { %p1057_p1 = scmp.ne.s32.totalorder %s217_s29, %s1056_s0  ;;  %s1192_s24 = smov [#allocation4]  }
  0x36   : > { %s1060_s17 = sshll.u32 %s1192_s24, 4  ;;  %s1061_s17 = int_to_ptr.vmem [resolvable:$false] %s1060_s17 }
  0x37   : > { %p1058_p3 = pnand %p1057_p1, %p1304_p7  ;;  %s1062_s21 = scalar_lea.vmem %s1061_s17, 1024 }
  0x38   : > { %p1063_p8 = scmp.lt.s32.totalorder %s217_s29, %s1061_s17  ;;  %p1064_p9 = scmp.lt.s32.totalorder %s1062_s21, %s1056_s0 }
  0x39   : > { %p1059_p6 = pneg %p1058_p3 }
  0x3a   : > { %p1065_p10 = por %p1064_p9, %p1063_p8 }
  0x3c   : > { %p1066_p11 = pnand %p1065_p10, %p1059_p6 }
  0x3e   : > { %1069 = shalt.err (!%p1066_p11)
}
  0x3f   : > { %s1193_s26 = smov 128   ;;  %s1194_s8 = smov 64  }
  0x40   : > { %s1195_s25 = smov 4  }
  0x41   : > { %928 = dma.hbm_to_vmem [thread:$0]  (%p1304_p7), %s215_s5, 512, %s217_s29, %s204_s27, %s1193_s26, %s1194_s8, %s1195_s25  }
  0x42 PF: > { %p878_p0 = scmp.ge.s32.totalorder %s1190_s22, 1  ;;  %p224_p2 = scmp.lt.s32.totalorder %s1190_s22, 5 }
  0x44   : > { %p225_p5 = pnand %p878_p0, %p224_p2 }
  0x45   : > { %s1354_s0 = sand.u32 (!%p225_p5), 1, %s1166_s16   ;;  %s237_s17 = sand.u32 (!%p225_p5), 1, %s1158_s14  }
  0x46   : > { %228 = sbr.rel (%p225_p5) target bundleno = 534 (0x216), region = 66  ;;  %s879_s28 = sshll.u32 (!%p225_p5), %s237_s17, 5 }
  0x47   : > { %s927_s21 = smul.u32 (!%p225_p5), 24, %s1354_s0  ;;  %s238_s4 = scalar_lea.sflag (!%p225_p5), [#allocation5], %s237_s17 }
  0x48   : > { %s241_s13 = scalar_lea.vmem (!%p225_p5), [#allocation4], %s879_s28 }
  0x49   : > { %s1358_s6 = scalar_lea.vmem (!%p225_p5), [#allocation3], %s927_s21 }
  0x4b   : > { %1141 = dma.done.wait (%p1310_p12), %s238_s4, 512  }
  0x4c   : > { %1143 = vsyncadd (%p1310_p12), %s238_s4, 4294966784  ;;  %s880_s29 = sshll.u32 %s1354_s0, 3  ;;  %p881_p7 = scmp.ne.s32.totalorder %s1174_s18, 0 }
  0x4d   : > { %s1365_s23 = scalar_lea.vmem [#allocation7], %s880_s29 }
  0x4e   : > { %273 = sbr.rel (%p881_p7) target bundleno = 85 (0x55), region = 78 }
  0x53   : > { %vm274_vm0 = vcmask 31744   ;;  %v1196_v3 = vmov 0.0  }
  0x54   : > { %275 = vst.msk [vmem:[#allocation2] sm:$0xff] %vm274_vm0, %v1196_v3 }
  0x55 PF: > { %v277_v4 = vld [vmem:[%s241_s13] sm:$0xf]  ;;  %vm285_vm1 = vcmask 1043456   ;;  %v279_v5 = vld [vmem:[%s241_s13 + $0x8] sm:$0xf]  ;;  %v318_v20 = vlaneseq  ;;  %vm352_vm2 = vcmask 1041409  }
  0x56   : > { %v286_v6 = vsel %vm285_vm1, %v277_v4, 0.0  ;;  %v292_v7 = vsel %vm285_vm1, %v279_v5, 0.0  ;;  %v278_v8 = vld [vmem:[%s241_s13 + $0x4] sm:$0xf]  ;;  %v280_v9 = vld [vmem:[%s241_s13 + $0xc] sm:$0xf] }
  0x57   : > { %287 = vadd.xlane.f32.xlu0 %v286_v6  ;;  %293 = vadd.xlane.f32.xlu1 %v292_v7  ;;  %v289_v10 = vsel %vm285_vm1, %v278_v8, 0.0  ;;  %v295_v11 = vsel %vm285_vm1, %v280_v9, 0.0  ;;  %v281_v12 = vld [vmem:[%s241_s13 + $0x10] sm:$0xf]  ;;  %v282_v13 = vld [vmem:[%s241_s13 + $0x14] sm:$0xf] }
  0x58   : > { %v298_v14 = vsel %vm285_vm1, %v281_v12, 0.0  ;;  %v301_v15 = vsel %vm285_vm1, %v282_v13, 0.0  ;;  %v283_v16 = vld [vmem:[%s241_s13 + $0x18] sm:$0xf]  ;;  %v284_v17 = vld [vmem:[%s241_s13 + $0x1c] sm:$0xf] }
  0x59   : > { %v304_v18 = vsel %vm285_vm1, %v283_v16, 0.0  ;;  %v307_v19 = vsel %vm285_vm1, %v284_v17, 0.0  ;;  %v319_v21 = vand.u32 127, %v318_v20  ;;  %v321_v22 = vshrl.u32 %v318_v20, 7  ;;  %p882_p12 = scmp.ne.s32.totalorder %s1174_s18, 1 }
  0x5a   : > { %vm354_vm3 = vcmask 1042434   ;;  %vm356_vm4 = vcmask 1043459   ;;  %vm358_vm5 = vcmask 1044484   ;;  %vm360_vm6 = vcmask 1045509  }
  0x5b   : > { %290 = vadd.xlane.f32.xlu0 %v289_v10  ;;  %296 = vadd.xlane.f32.xlu1 %v295_v11  ;;  %v322_v25 = vsub.s32 %v319_v21, %v321_v22  ;;  %vm362_vm7 = vcmask 1046534   ;;  %vm364_vm8 = vcmask 1047559   ;;  %v276_v45 = vld [vmem:[#allocation2] sm:$0xff]  ;;  %vm368_vm9 = vcmask 31744  }
  0x5f   : > { %299 = vadd.xlane.f32.xlu0 %v298_v14  ;;  %302 = vadd.xlane.f32.xlu1 %v301_v15 }
  0x63   : > { %305 = vadd.xlane.f32.xlu0 %v304_v18  ;;  %308 = vadd.xlane.f32.xlu1 %v307_v19 }
  0xe0   : > { %v288_v23 = vpop.xlane.xlu0 %287  ;;  %v294_v24 = vpop.xlane.xlu1 %293 }
  0xe1   : > { %v323_v28 = vrot.slane %v288_v23, %v322_v25  ;;  %v331_v31 = vrot.slane %v294_v24, %v322_v25 }
  0xe4   : > { %v291_v26 = vpop.xlane.xlu0 %290  ;;  %v297_v27 = vpop.xlane.xlu1 %296 }
  0xe5   : > { %v327_v29 = vrot.slane %v291_v26, %v322_v25  ;;  %v335_v30 = vrot.slane %v297_v27, %v322_v25 }
  0xe7   : > { %v353_v32 = vsel %vm352_vm2, %v327_v29, %v323_v28 }
  0xe8   : > { %v355_v33 = vsel %vm354_vm3, %v331_v31, %v353_v32  ;;  %v300_v34 = vpop.xlane.xlu0 %299  ;;  %v303_v35 = vpop.xlane.xlu1 %302 }
  0xe9   : > { %v357_v36 = vsel %vm356_vm4, %v335_v30, %v355_v33  ;;  %v339_v37 = vrot.slane %v300_v34, %v322_v25  ;;  %v343_v38 = vrot.slane %v303_v35, %v322_v25 }
  0xeb   : > { %v359_v39 = vsel %vm358_vm5, %v339_v37, %v357_v36 }
  0xec   : > { %v306_v40 = vpop.xlane.xlu0 %305  ;;  %v309_v41 = vpop.xlane.xlu1 %308  ;;  %v361_v44 = vsel %vm360_vm6, %v343_v38, %v359_v39 }
  0xed   : > { %v347_v42 = vrot.slane %v306_v40, %v322_v25  ;;  %v351_v43 = vrot.slane %v309_v41, %v322_v25 }
  0xef   : > { %v363_v46 = vsel %vm362_vm7, %v347_v42, %v361_v44  ;;  %373 = sbr.rel (%p882_p12) target bundleno = 511 (0x1ff), region = 82 }
  0xf0   : > { %v365_v47 = vsel %vm364_vm8, %v351_v43, %v363_v46 }
  0xf1   : > { %v367_v48 = vadd.f32 %v365_v47, %v276_v45 }
  0xf3   : > { %369 = vst.msk [vmem:[#allocation2] sm:$0xff] %vm368_vm9, %v367_v48 }
  0xf4   : > { %v376_v49 = vld [vmem:[%s1466_s2] sm:$0x3f]  ;;  %v1197_v50 = vmov 0.0   ;;  %v1198_v51 = vmov 1983009808   ;;  %vm1199_vm10 = vmmov 0  }
  0xf5   : > { %908 = vmatprep.subr.bf16.mxu1 %v1197_v50  ;;  %v380_v52 = vunpack.c.l.s4 %v1198_v51  ;;  %v886_v53 = vld [vmem:[%s1466_s2 + $0x6] sm:$0x3f]  ;;  %910 = vmatprep.mubr.msk.bf16.mxu1 %vm1199_vm10, %v1197_v50  ;;  %v1200_v55 = vmov 0   ;;  %v895_v56 = vld [vmem:[%s1358_s6 + $0x10] sm:$0xff]  ;;  %v378_v58 = vcombine.high %v376_v49, %v376_v49  ;;  %vm397_vm11 = vcmask 1041408  }
  0xf6   : > { %v488_v54 = vld [vmem:[%s1358_s6] sm:$0xff]  ;;  %439 = vmatprep.mubr.bf16.mxu0 %v1200_v55  ;;  %v503_v59 = vcombine.high %v886_v53, %v886_v53  ;;  %1033 = vset.pattern.permute.xlu0 %v1200_v55  ;;  %v890_v62 = vld [vmem:[%s1358_s6 + $0x8] sm:$0xff] }
  0xf7   : > { %v381_v57 = vunpack.c.0.s8 %v380_v52  ;;  %1034 = vset.pattern.permute.xlu1 %v1200_v55  ;;  %491 = vperm.xlu0 %1033, %v488_v54   ;;  %v891_v3 = vld [vmem:[%s1466_s2 + $0xc] sm:$0x3f] }
  0xf8   : > { %735 = vperm.xlu1 %1034, %v895_v56   ;;  %v625_v11 = vcombine.high %v891_v3, %v891_v3 }
  0xf9   : > { %v384_v60 = vsub.s32 %v381_v57, %v321_v22 }
  0xfa   : > { %v374_v61 = vld [vmem:[#allocation2] sm:$0xff] }
  0xfb   : > { %v385_v63 = vrot.slane %v376_v49, %v384_v60  ;;  %v392_v0 = vrot.slane %v378_v58, %v384_v60  ;;  %v510_v1 = vrot.slane %v886_v53, %v384_v60  ;;  %v517_v2 = vrot.slane %v503_v59, %v384_v60  ;;  %613 = vperm.xlu0 %1033, %v890_v62  }
  0xfc   : > { %v375_v4 = vpack.c.bf16 %v374_v61, %v374_v61  ;;  %v632_v5 = vrot.slane %v891_v3, %v384_v60  ;;  %v639_v14 = vrot.slane %v625_v11, %v384_v60 }
  0xfd   : > { %v393_v6 = vcombine.high %v385_v63, %v385_v63  ;;  %v405_v7 = vsel %vm397_vm11, %v392_v0, 0  ;;  %v399_v8 = vsel %vm397_vm11, %v385_v63, 0  ;;  %v518_v9 = vcombine.high %v510_v1, %v510_v1 }
  0xfe   : > { %909 = vmatpush3.bf16.msra.mxu1 %v405_v7  ;;  %v526_v10 = vsel %vm397_vm11, %v517_v2, 0  ;;  %v520_v12 = vsel %vm397_vm11, %v510_v1, 0  ;;  %v640_v13 = vcombine.high %v632_v5, %v632_v5  ;;  %v648_v15 = vsel %vm397_vm11, %v639_v14, 0 }
  0xff   : > { %883 = vmatprep.subr.msk.bf16.mxu0 %vm397_vm11, %v393_v6  ;;  %914 = vmatprep.subr.bf16.mxu1 %v1197_v50  ;;  %v642_v16 = vsel %vm397_vm11, %v632_v5, 0 }
 0x100   : > { %422 = vmatpush1.bf16.msra.mxu0 %v399_v8 }
 0x101   : > { %911 = vmatmul.mubr.msk.bf16.vlgmr.msra.gmra.mxu1 %vm368_vm9, %v375_v4  ;;  %887 = vmatprep.subr.msk.bf16.mxu0 %vm397_vm11, %v518_v9 }
 0x102   : > { %915 = vmatpush3.bf16.msra.mxu1 %v526_v10  ;;  %916 = vmatprep.mubr.msk.bf16.mxu1 %vm1199_vm10, %v1197_v50 }
 0x103   : > { %884 = vmatmul.mubr.msk.bf16.vlgmr.msra.gmra.mxu0 %vm368_vm9, %v375_v4  ;;  %920 = vmatprep.subr.bf16.mxu1 %v1197_v50 }
 0x104   : > { %543 = vmatpush1.bf16.msra.mxu0 %v520_v12  ;;  %560 = vmatprep.mubr.bf16.mxu0 %v1200_v55 }
 0x105   : > { %892 = vmatprep.subr.msk.bf16.mxu0 %vm397_vm11, %v640_v13 }
 0x109   : > { %917 = vmatmul.mubr.msk.bf16.vlgmr.msra.gmra.mxu1 %vm368_vm9, %v375_v4 }
 0x10a   : > { %921 = vmatpush3.bf16.msra.mxu1 %v648_v15  ;;  %922 = vmatprep.mubr.msk.bf16.mxu1 %vm1199_vm10, %v1197_v50 }
 0x10b   : > { %888 = vmatmul.mubr.msk.bf16.vlgmr.msra.gmra.mxu0 %vm368_vm9, %v375_v4 }
 0x10c   : > { %665 = vmatpush1.bf16.msra.mxu0 %v642_v16  ;;  %682 = vmatprep.mubr.bf16.mxu0 %v1200_v55 }
 0x111   : > { %923 = vmatmul.mubr.msk.bf16.vlgmr.msra.gmra.mxu1 %vm368_vm9, %v375_v4 }
 0x113   : > { %893 = vmatmul.mubr.msk.bf16.vlgmr.msra.gmra.mxu0 %vm368_vm9, %v375_v4 }
 0x172   : > { %v492_v28 = vpop.permute.xlu0 %491 }
 0x173   : > { %v736_v40 = vpop.permute.xlu1 %735 }
 0x176   : > { %v614_v33 = vpop.permute.xlu0 %613 }
 0x1c1   : > { %v482_v17 = vpop.f32.mrf.mxu1 }
 0x1c2   : > { %v496_v57 = vmul.f32 %v492_v28, %v482_v17 }
 0x1c3   : > { %v441_v18 = vpop.f32.mrf.mxu0  ;;  %v912_v19 = vpop.f32.mrf.mxu1 }
 0x1c4   : > { %v494_v51 = vmul.f32 %v492_v28, %v441_v18 }
 0x1c5   : > { %v443_v20 = vpop.f32.mrf.mxu0  ;;  %v485_v21 = vpop.f32.mrf.mxu1 }
 0x1c6   : > { %v495_v39 = vmul.f32 %v492_v28, %v443_v20 }
 0x1c7   : > { %v445_v22 = vpop.f32.mrf.mxu0  ;;  %v913_v23 = vpop.f32.mrf.mxu1 }
 0x1c9   : > { %v446_v24 = vpop.f32.mrf.mxu0  ;;  %v603_v25 = vpop.f32.mrf.mxu1 }
 0x1ca   : > { %v618_v58 = vmul.f32 %v614_v33, %v603_v25 }
 0x1cb   : > { %v562_v26 = vpop.f32.mrf.mxu0  ;;  %v918_v27 = vpop.f32.mrf.mxu1 }
 0x1cc   : > { %v616_v50 = vmul.f32 %v614_v33, %v562_v26  ;;  %v621_v59 = vadd.f32 %v618_v58, %v496_v57 }
 0x1cd   : > { %v564_v29 = vpop.f32.mrf.mxu0  ;;  %v606_v30 = vpop.f32.mrf.mxu1 }
 0x1ce   : > { %v617_v36 = vmul.f32 %v614_v33, %v564_v29  ;;  %v619_v53 = vadd.f32 %v616_v50, %v494_v51 }
 0x1cf   : > { %v566_v31 = vpop.f32.mrf.mxu0  ;;  %v919_v32 = vpop.f32.mrf.mxu1 }
 0x1d0   : > { %v620_v43 = vadd.f32 %v617_v36, %v495_v39 }
 0x1d1   : > { %v567_v34 = vpop.f32.mrf.mxu0  ;;  %v725_v35 = vpop.f32.mrf.mxu1 }
 0x1d2   : > { %v740_v60 = vmul.f32 %v736_v40, %v725_v35 }
 0x1d3   : > { %v684_v37 = vpop.f32.mrf.mxu0  ;;  %v924_v38 = vpop.f32.mrf.mxu1 }
 0x1d4   : > { %v738_v52 = vmul.f32 %v736_v40, %v684_v37  ;;  %v743_v63 = vadd.f32 %v740_v60, %v621_v59 }
 0x1d5   : > { %v686_v41 = vpop.f32.mrf.mxu0  ;;  %v728_v42 = vpop.f32.mrf.mxu1 }
 0x1d6   : > { %v739_v44 = vmul.f32 %v736_v40, %v686_v41  ;;  %v741_v54 = vadd.f32 %v738_v52, %v619_v53 }
 0x1d7   : > { %v688_v45 = vpop.f32.mrf.mxu0  ;;  %v925_v46 = vpop.f32.mrf.mxu1 }
 0x1d8   : > { %v742_v47 = vadd.f32 %v739_v44, %v620_v43 }
 0x1d9   : > { %v689_v48 = vpop.f32.mrf.mxu0 }
 0x1da   : > { %v896_v49 = vmul.f32 -1.442695, %v742_v47 }
 0x1dc   : > { %1038 = vpow2.f32 %v896_v49 }
 0x1dd   : > { %1040 = vtanh.f32 %v741_v54 }
 0x1e9   : > { %v1039_v55 = vpop.eup %1038 }
 0x1ea   : > { %v748_v56 = vadd.f32 1.0, %v1039_v55  ;;  %v1041_v61 = vpop.eup %1040 }
 0x1ec   : > { %1042 = vrcp.f32 %v748_v56 }
 0x1f9   : > { %v1043_v62 = vpop.eup %1042 }
 0x1fa   : > { %v751_v0 = vmul.f32 %v1043_v62, %v1041_v61 }
 0x1fc   : > { %v752_v1 = vadd.f32 %v751_v0, %v743_v63 }
 0x1fe   : > { %753 = vst [vmem:[%s1365_s23] sm:$0xff] %v752_v1 }
 0x1ff PF: > { %s898_s26 = sshll.u32 %s1178_s19, 7  ;;  %s768_s21 = sshll.u32 %s1365_s23, 4  ;;  %s769_s21 = int_to_ptr.vmem [resolvable:$true] %s768_s21 }
 0x200   : > { %s766_s17 = scalar_lea.hbm %s1467_s3, %s898_s26  ;;  %s755_s28 = scalar_lea.sflag [#allocation6], %s1354_s0 }
 0x201   : > { %s1070_s6 = scalar_lea.vmem %s769_s21, 128  ;;  %s1201_s4 = smov [#allocation7]  }
 0x202   : > { %p1071_p1 = scmp.ne.s32.totalorder %s769_s21, %s1070_s6  ;;  %s1074_s13 = sshll.u32 %s1201_s4, 4  ;;  %s1075_s13 = int_to_ptr.vmem [resolvable:$false] %s1074_s13 }
 0x203   : > { %s1076_s29 = scalar_lea.vmem %s1075_s13, 256  ;;  %p1077_p8 = scmp.lt.s32.totalorder %s769_s21, %s1075_s13 }
 0x204   : > { %p1072_p3 = pnand %p1071_p1, %p1323_p13  ;;  %p1078_p9 = scmp.lt.s32.totalorder %s1076_s29, %s1070_s6 }
 0x206   : > { %p1073_p6 = pneg %p1072_p3  ;;  %p1079_p10 = por %p1078_p9, %p1077_p8 }
 0x208   : > { %p1080_p11 = pnand %p1079_p10, %p1073_p6 }
 0x20a   : > { %1083 = shalt.err (!%p1080_p11)
}
 0x20b   : > { %s1084_s19 = scalar_lea.hbm %s766_s17, 128  ;;  %s1088_s7 = scalar_lea.hbm %s1467_s3, 256 }
 0x20c   : > { %p1085_p0 = scmp.ne.s32.totalorder %s766_s17, %s1084_s19  ;;  %p1089_p7 = scmp.lt.s32.totalorder %s766_s17, %s1467_s3 }
 0x20d   : > { %p1090_p12 = scmp.lt.s32.totalorder %s1088_s7, %s1084_s19 }
 0x20e   : > { %p1086_p2 = pnand %p1085_p0, %p1323_p13 }
 0x20f   : > { %p1091_p1 = por %p1090_p12, %p1089_p7 }
 0x210   : > { %p1087_p5 = pneg %p1086_p2 }
 0x212   : > { %p1092_p3 = pnand %p1091_p1, %p1087_p5 }
 0x214   : > { %1095 = shalt.err (!%p1092_p3)
}
 0x215   : > { %930 = dma.vmem_to_hbm [thread:$0]  (%p1323_p13), %s769_s21, 128, %s766_s17, %s755_s28  }
 0x216 PF: > { %p936_p6 = scmp.ge.s32.totalorder %s1190_s22, 2  ;;  %s780_s27 = sand.u32 1, %s1150_s12  }
 0x217   : > { %s781_s18 = scalar_lea.sflag [#allocation6], %s780_s27 }
 0x218   : > { %p933_p8 = pnand %p936_p6, %p1329_p4 }
 0x21a   : > { %p934_p9 = pneg %p933_p8 }
 0x21c   : > { %1145 = dma.done.wait (%p934_p9), %s781_s18, 128  }
 0x21d   : > { %1147 = vsyncadd (%p934_p9), %s781_s18, 4294967168  ;;  %s19_s22 = sadd.s32 1, %s1190_s22   ;;  %s1484_s10 = sld [smem:[#allocation10_spill]] }
 0x21e   : > { %p16_p10 = scmp.ge.s32.totalorder %s19_s22, 6   ;;  %s1485_s17 = sld [smem:[#allocation14_spill]] }
 0x21f   : > { %s1486_s19 = sld [smem:[#allocation11_spill]]  ;;  %s1489_s12 = smov %s1166_s16 }
 0x220   : > { %s1487_s24 = sld [smem:[#allocation12_spill]]  ;;  %s1490_s13 = smov %s1158_s14 }
 0x221   : > { %s1488_s21 = sld [smem:[#allocation13_spill]]  ;;  %s1491_s14 = smov %s1162_s15 }
 0x222   : > { %s1492_s15 = smov %s1318_s9  ;;  %s1494_s18 = smov %s1182_s20 }
 0x223   : > { %s1493_s16 = smov %s1484_s10  ;;  %18 = sbr.rel (!%p16_p10) target bundleno = 11 (0xb), region = 135 }
 0x226   : > { %s1495_s20 = smov %s1487_s24 }
 0x228   :  { %786 = vsyncpa [#allocation5], 1 }
 0x229   :  { %788 = vsyncpa [#allocation5 + $0x1], 1 }
 0x22a   :  { %789 = vsyncpa [#allocation6], 1 }
 0x22b   :  { %791 = vsyncpa [#allocation6 + $0x1], 1 }

</bundles_post_ra>
